<compile_context>
chip_gen: v5e
topology: v5e:2x2
jax: 0.10.0
libtpu: 0.0.40
codegen_flags: <defaults>
</compile_context>

<pallas_src>
import jax
import jax.numpy as jnp
from jax.experimental import pallas as pl
from jax.experimental.pallas import tpu as pltpu

IN_FEATURES = 60
HIDDEN = 100
OUT_FEATURES = 10


def _round_up(n, m):
    return ((n + m - 1) // m) * m


def _folded_mlp_kernel(x_ref, w_ref, b_ref, o_ref):
    # Single fused matmul (layers pre-folded in the wrapper) + bias add.
    acc = jnp.dot(x_ref[...], w_ref[...], preferred_element_type=jnp.float32)
    o_ref[...] = (acc + b_ref[...]).astype(o_ref.dtype)


def prepare_params(w1, b1, w2, b2):
    """Fold PyTorch-layout params once (hoisted out of the forward path).

    w1: (100, 60), b1: (100,), w2: (10, 100), b2: (10,)
      -> w_folded: (60, 10) f32, b_folded: (1, 10) f32.
    """
    w1f = w1.astype(jnp.float32)
    w2f = w2.astype(jnp.float32)
    w_folded = jnp.dot(w1f.T, w2f.T)                                     # (60, 10)
    b_folded = jnp.dot(b1.astype(jnp.float32), w2f.T) + b2.astype(jnp.float32)
    return w_folded, b_folded.reshape(1, OUT_FEATURES)


def _tile_rows(batch, block_b):
    # Aim for >= 4 grid steps on large batches (amortizes per-step overhead
    # and shards across v7x's 2 TensorCores), tile always a multiple of 8.
    tb = _round_up(max(pl.cdiv(batch, 4), 1), 8)
    return max(min(tb, block_b), 8)


def net_forward(x, w_folded, b_folded, *, block_b=4096):
    """x: (B, 60) f32.  Returns (B, 10) f32."""
    B = x.shape[0]
    tb = _tile_rows(B, block_b)
    grid = (pl.cdiv(B, tb),)

    return pl.pallas_call(
        _folded_mlp_kernel,
        out_shape=jax.ShapeDtypeStruct((B, OUT_FEATURES), jnp.float32),
        grid_spec=pltpu.PrefetchScalarGridSpec(
            num_scalar_prefetch=0,
            grid=grid,
            in_specs=[
                # Stream x batch tiles; last block dim == full array dim (60).
                pl.BlockSpec((tb, IN_FEATURES), lambda i: (i, 0)),
                # Folded weight / bias: resident in VMEM across all steps.
                pl.BlockSpec((IN_FEATURES, OUT_FEATURES), lambda i: (0, 0)),
                pl.BlockSpec((1, OUT_FEATURES), lambda i: (0, 0)),
            ],
            # True output width (10): one masked vst per 8-row vreg, 12.8x
            # fewer output bytes than a 128-lane pad; partial last batch
            # block's out-of-bounds rows are dropped on writeback.
            out_specs=pl.BlockSpec((tb, OUT_FEATURES), lambda i: (i, 0)),
        ),
        compiler_params=pltpu.CompilerParams(
            dimension_semantics=("parallel",),
        ),
    )(x.astype(jnp.float32), w_folded, b_folded)


def init_params(key):
    """Deterministic init mimicking nn.Linear's U(-1/sqrt(fan_in), 1/sqrt(fan_in))."""
    k1, k2, k3, k4 = jax.random.split(key, 4)
    bound1 = 1.0 / jnp.sqrt(60.0)
    bound2 = 1.0 / jnp.sqrt(100.0)
    w1 = jax.random.uniform(k1, (HIDDEN, IN_FEATURES), jnp.float32, -bound1, bound1)
    b1 = jax.random.uniform(k2, (HIDDEN,), jnp.float32, -bound1, bound1)
    w2 = jax.random.uniform(k3, (OUT_FEATURES, HIDDEN), jnp.float32, -bound2, bound2)
    b2 = jax.random.uniform(k4, (OUT_FEATURES,), jnp.float32, -bound2, bound2)
    return w1, b1, w2, b2


def _torch_ref(x, w1, b1, w2, b2):
    return (x @ w1.T + b1) @ w2.T + b2


if __name__ == "__main__":
    key = jax.random.PRNGKey(0)
    k_x, k_x2, k_x3, k_p = jax.random.split(key, 4)
    w1, b1, w2, b2 = init_params(k_p)
    w_folded, b_folded = prepare_params(w1, b1, w2, b2)

    # --- small batch, single grid step ---
    B = 8
    x = jax.random.normal(k_x, (B, IN_FEATURES), jnp.float32)
    out = net_forward(x, w_folded, b_folded)
    jax.block_until_ready(out)
    ref = _torch_ref(x, w1, b1, w2, b2)
    assert out.shape == (B, OUT_FEATURES)
    assert jnp.allclose(out, ref, atol=1e-4, rtol=1e-4), "B=8 mismatch"

    # --- batch not a multiple of the tile (exercises the partial last block) ---
    B2 = 13
    x2 = jax.random.normal(k_x2, (B2, IN_FEATURES), jnp.float32)
    out2 = net_forward(x2, w_folded, b_folded)
    jax.block_until_ready(out2)
    ref2 = _torch_ref(x2, w1, b1, w2, b2)
    assert out2.shape == (B2, OUT_FEATURES)
    assert jnp.allclose(out2, ref2, atol=1e-4, rtol=1e-4), "partial-block mismatch"

    # --- multi-step grid (tile capped at ~B/4 so the grid has >=4 steps) ---
    B3 = 300
    x3 = jax.random.normal(k_x3, (B3, IN_FEATURES), jnp.float32)
    out3 = net_forward(x3, w_folded, b_folded)
    jax.block_until_ready(out3)
    ref3 = _torch_ref(x3, w1, b1, w2, b2)
    assert out3.shape == (B3, OUT_FEATURES)
    assert jnp.allclose(out3, ref3, atol=1e-4, rtol=1e-4), "multi-step grid mismatch"

    print("KERNEL_OK")
</pallas_src>

<mosaic_0001>
module attributes {stable_mosaic.version = 11 : i64} {
  func.func @_folded_mlp_kernel(%arg0: i32, %arg1: memref<8x60xf32, #tpu.memory_space<vmem>>, %arg2: memref<60x10xf32, #tpu.memory_space<vmem>>, %arg3: memref<1x10xf32, #tpu.memory_space<vmem>>, %arg4: memref<8x10xf32, #tpu.memory_space<vmem>>) attributes {dimension_semantics = [#tpu.dimension_semantics<parallel>], iteration_bounds = array<i64: 1>, scalar_prefetch = 0 : i64, scratch_operands = 0 : i64, tpu.core_type = #tpu.core_type<tc>, window_params = [{transform_indices = @transform_0, window_bounds = array<i64: 8, 60>}, {pipeline_mode = #tpu.pipeline_mode<synchronous>, transform_indices = @transform_1, window_bounds = array<i64: 60, 10>}, {pipeline_mode = #tpu.pipeline_mode<synchronous>, transform_indices = @transform_2, window_bounds = array<i64: 1, 10>}, {transform_indices = @transform_3, window_bounds = array<i64: 8, 10>}]} {
    %c0 = arith.constant 0 : index
    %c0_0 = arith.constant 0 : index
    %0 = vector.load %arg1[%c0, %c0_0] : memref<8x60xf32, #tpu.memory_space<vmem>>, vector<8x60xf32>
    %c0_1 = arith.constant 0 : index
    %c0_2 = arith.constant 0 : index
    %1 = vector.load %arg2[%c0_1, %c0_2] : memref<60x10xf32, #tpu.memory_space<vmem>>, vector<60x10xf32>
    %cst = arith.constant dense<0.000000e+00> : vector<8x10xf32>
    %2 = tpu.matmul %0, %1, %cst {dimension_numbers = #tpu.dot_dimension_numbers<[1], [0], [0], [1], [0, 0, 1, 1], [], []>} : vector<8x60xf32>, vector<60x10xf32>, vector<8x10xf32> -> vector<8x10xf32>
    %c0_3 = arith.constant 0 : index
    %c0_4 = arith.constant 0 : index
    %3 = vector.load %arg3[%c0_3, %c0_4] : memref<1x10xf32, #tpu.memory_space<vmem>>, vector<1x10xf32>
    %4 = vector.broadcast %3 : vector<1x10xf32> to vector<8x10xf32>
    %5 = arith.addf %2, %4 : vector<8x10xf32>
    %c0_5 = arith.constant 0 : index
    %c0_6 = arith.constant 0 : index
    %6 = vector.load %arg4[%c0_5, %c0_6] : memref<8x10xf32, #tpu.memory_space<vmem>>, vector<8x10xf32>
    tpu.vector_store %arg4[%c0_5, %c0_6], %5 {strides = array<i32>} : memref<8x10xf32, #tpu.memory_space<vmem>>, vector<8x10xf32>,
    return
  }
  func.func @transform_0(%arg0: i32) -> (i32, i32) {
    %c0_i32 = arith.constant 0 : i32
    %c0_i32_0 = arith.constant 0 : i32
    return %arg0, %c0_i32 : i32, i32
  }
  func.func @transform_1(%arg0: i32) -> (i32, i32) {
    %c0_i32 = arith.constant 0 : i32
    %c0_i32_0 = arith.constant 0 : i32
    %c0_i32_1 = arith.constant 0 : i32
    return %c0_i32, %c0_i32_0 : i32, i32
  }
  func.func @transform_2(%arg0: i32) -> (i32, i32) {
    %c0_i32 = arith.constant 0 : i32
    %c0_i32_0 = arith.constant 0 : i32
    %c0_i32_1 = arith.constant 0 : i32
    return %c0_i32, %c0_i32_0 : i32, i32
  }
  func.func @transform_3(%arg0: i32) -> (i32, i32) {
    %c0_i32 = arith.constant 0 : i32
    %c0_i32_0 = arith.constant 0 : i32
    return %arg0, %c0_i32 : i32, i32
  }
}

</mosaic_0001>

<bundles_post_ra>
// kernel: tpu_custom_call.1
= control target key start
LH: loop header
LB: loop body
LE: loop exit
PB: predicated region body
PF: predicated region fallthrough
CT: control target
= control target key end

     0   :  { %vm32_vm0 = vcmask 1043456   ;;  %s158_s0 = inlined_call_operand.vmem [shape: f32[8,60], index: 0, kind: input, shape index: {}]   ;;  %s159_s1 = inlined_call_operand.vmem [shape: f32[60,10], index: 1, kind: input, shape index: {}]   ;;  %s160_s2 = inlined_call_operand.vmem [shape: f32[1,10], index: 2, kind: input, shape index: {}]   ;;  %s161_s3 = inlined_call_operand.hbm [shape: f32[8,10], index: 3, kind: output, shape index: {}]  }
   0x1   :  { %v23_v0 = vld [vmem:[%s159_s1 + $0x38] sm:$0xf]  ;;  %v22_v1 = vld [vmem:[%s159_s1 + $0x30] sm:$0xff]  ;;  %v21_v2 = vld [vmem:[%s159_s1 + $0x28] sm:$0xff] }
   0x2   :  { %74 = vmatpush.msk.msra.mxu0 %vm32_vm0, %v23_v0 }
   0x4   :  { %45 = vmatpush.msra.mxu0 %v22_v1 }
   0x5   :  { %8 = vsyncpa [#allocation3], 0  ;;  %v20_v3 = vld [vmem:[%s159_s1 + $0x20] sm:$0xff]  ;;  %v19_v4 = vld [vmem:[%s159_s1 + $0x18] sm:$0xff]  ;;  %vm28_vm1 = vcmask 490496   ;;  %s104_s5 = smov [#allocation2]  }
   0x6   :  { %46 = vmatpush.msra.mxu0 %v21_v2  ;;  %v18_v5 = vld [vmem:[%s159_s1 + $0x10] sm:$0xff]  ;;  %v17_v6 = vld [vmem:[%s159_s1 + $0x8] sm:$0xff]  ;;  %v16_v7 = vld [vmem:[%s159_s1] sm:$0xff]  ;;  %s63_s6 = sshll.u32 %s104_s5, 4  ;;  %s65_s9 = sshll.u32 %s161_s3, 4  ;;  %vm56_vm2 = vcmask 80896   ;;  %s64_s6 = int_to_ptr.vmem [resolvable:$true] %s63_s6  ;;  %s66_s9 = int_to_ptr.hbm [resolvable:$true] %s65_s9 }
   0x7   :  { %v15_v8 = vld [vmem:[%s158_s0] sm:$0xff] }
   0x8   :  { %47 = vmatpush.msra.mxu0 %v20_v3  ;;  %v77_v9 = vld [vmem:[%s160_s2] ss:$0 sm:$0xff] }
   0xa   :  { %48 = vmatpush.msra.mxu0 %v19_v4 }
   0xc   :  { %49 = vmatpush.msra.mxu0 %v18_v5 }
   0xe   :  { %50 = vmatpush.msra.mxu0 %v17_v6 }
  0x10   :  { %51 = vmatpush.msra.mxu0 %v16_v7 }
  0x11   :  { %75 = vmatmul.msk.f32.vlgmr.msra.gmra.mxu0 %vm28_vm1, %v15_v8 }
  0x8e   :  { %v53_v10 = vpop.f32.mrf.mxu0 }
  0x8f   :  { %v54_v11 = vadd.f32 %v77_v9, %v53_v10 }
  0x91   :  { %57 = vst.msk [vmem:[#allocation2] sm:$0xff] %vm56_vm2, %v54_v11 }
  0x92   :  { %68 = dma.vmem_to_hbm [thread:$0]  %s64_s6, 128, %s66_s9, [#allocation3]  }
  0x93   :  { %102 = dma.done.wait [#allocation3], 128  }
  0x94   :  { %103 = vsyncadd [#allocation3], 4294967168 }
  0x95   :  { %73 = vsyncpa [#allocation3], 1 }

</bundles_post_ra>
